<compile_context>
chip_gen: v7x
topology: tpu7x:2x2x1
jax: 0.10.0
libtpu: 0.0.40
codegen_flags: <defaults>
</compile_context>

<pallas_src>
import functools

import jax
import jax.numpy as jnp
from jax import lax
from jax.experimental import pallas as pl
from jax.experimental.pallas import tpu as pltpu


def _fused_attention_kernel(x_ref, wqkv_ref, bqkv_ref, o_ref, *, t_valid):
    """One grid step: (block_b, Tp, dp) slab of the batch, full attention."""
    Bb, Tp, dp = x_ref.shape
    cdt = x_ref.dtype                                 # compute dtype (bf16 for f32 inputs)

    # ---- Fused Q/K/V projection on an MXU-sized slab: (Bb*Tp, dp) @ (dp, 3dp)
    # Tp % 8 == 0 and dp % 128 == 0, so this reshape is a free view.
    x2 = x_ref[...].reshape(Bb * Tp, dp)
    qkv = jnp.dot(x2, wqkv_ref[...], preferred_element_type=jnp.float32)
    qkv = qkv + bqkv_ref[...].astype(jnp.float32)     # bias broadcast, f32
    qkv = qkv.reshape(Bb, Tp, 3 * dp).astype(cdt)

    # 128-lane-aligned static slices (dp is a multiple of 128).
    q = qkv[:, :, 0 * dp:1 * dp]                      # already pre-scaled by 1/sqrt(d)
    k = qkv[:, :, 1 * dp:2 * dp]
    v = qkv[:, :, 2 * dp:3 * dp]

    # ---- scores = (Q/sqrt(d)) K^T : batched dot_general, no explicit transpose
    s = lax.dot_general(q, k, (((2,), (2,)), ((0,), (0,))),
                        preferred_element_type=jnp.float32)        # (Bb, Tp, Tp) f32

    # Mask out padded key positions (static branch; only emitted if Tp > T).
    if t_valid != Tp:
        col = lax.broadcasted_iota(jnp.int32, (1, 1, Tp), 2)
        s = jnp.where(col < t_valid, s, -1e30)

    # ---- numerically-stable softmax over the key axis ----
    s = s - jnp.max(s, axis=-1, keepdims=True)
    p = jnp.exp(s)
    denom = jnp.sum(p, axis=-1, keepdims=True)
    p = p * pl.reciprocal(denom, approx=True)                       # EUP vrcp

    # ---- out = P V (accumulate in f32) ----
    out = lax.dot_general(p.astype(cdt), v, (((2,), (1,)), ((0,), (0,))),
                          preferred_element_type=jnp.float32)       # (Bb, Tp, dp)
    o_ref[...] = out.astype(o_ref.dtype)                            # lane-dense store


def _block_vmem_bytes(bb, Tp, dp, in_is, out_is, w_is, c_is):
    """Rough per-step VMEM footprint for block_b = bb."""
    io = 2 * bb * Tp * dp * (in_is + out_is)          # x / out blocks, double-buffered
    wb = 2 * (dp * 3 * dp * w_is + 3 * dp * 4)        # fused weights + bias buffers
    qkv = bb * Tp * 3 * dp * (4 + c_is)               # f32 QKV result + cast copy
    sp = bb * Tp * Tp * (8 + c_is)                    # s (f32) + p (f32) + p cast
    acc = bb * Tp * dp * 4                            # f32 output before cast
    return io + wb + qkv + sp + acc


def _pick_block_b(B, Tp, dp, in_is, out_is, w_is, c_is, budget, m_target=512):
    """VMEM-aware block_b: fits budget, prefers >=2 grid steps (megacore) and
    M = block_b*Tp >= m_target for MXU row fill."""
    divs = [i for i in range(1, B + 1) if B % i == 0]
    feasible = [bb for bb in divs
                if _block_vmem_bytes(bb, Tp, dp, in_is, out_is, w_is, c_is) <= budget]
    if not feasible:
        # Even block_b = 1 exceeds the budget (huge T): degrade gracefully.
        # TODO(synk): switch to flash-style KV tiling in this regime.
        return 1
    pool = [bb for bb in feasible if B // bb >= 2] or feasible
    big = [bb for bb in pool if bb * Tp >= m_target]
    return min(big) if big else max(pool)


def my_self_attention(x, wq, wk, wv, bq, bk, bv, *, block_b=None):
    """x: (B, T, d); wq/wk/wv: (d, d) in nn.Linear (out, in) convention; b*: (d,)."""
    B, T, d = x.shape
    out_dtype = x.dtype

    # Padded geometry: lane-dense last dim, sublane-aligned sequence dim.
    dp = ((d + 127) // 128) * 128
    Tp = ((T + 7) // 8) * 8

    # bf16 MXU operands (f32 accumulation) when inputs are f32.
    compute_dtype = jnp.bfloat16 if out_dtype == jnp.float32 else out_dtype

    # ---- One-time weight prep (hoisted): transpose to (in, out), fold the
    # 1/sqrt(d) softmax scale into the Q columns + bias, zero-pad to dp, fuse.
    scale = 1.0 / (float(d) ** 0.5)

    def pad_w(w):                                     # (out, in) -> (dp_in, dp_out)
        return jnp.pad(w.T, ((0, dp - d), (0, dp - d)))

    def pad_b(b):
        return jnp.pad(b, (0, dp - d))

    wqkv = jnp.concatenate([pad_w(wq * scale), pad_w(wk), pad_w(wv)],
                           axis=1).astype(compute_dtype)            # (dp, 3dp)
    bqkv = jnp.concatenate([pad_b(bq * scale), pad_b(bk), pad_b(bv)]
                           ).reshape(1, 3 * dp).astype(jnp.float32) # (1, 3dp)

    # Zero-pad x (padded keys are masked in-kernel; padded rows/cols cropped).
    xp = jnp.pad(x, ((0, 0), (0, Tp - T), (0, dp - d))).astype(compute_dtype)

    in_is = jnp.dtype(compute_dtype).itemsize
    out_is = jnp.dtype(out_dtype).itemsize

    # VMEM budget: 24 MiB for the estimate (safe on v5e/v6e/v7x scoped limits),
    # scoped limit raised to 48 MiB for pipeline/compiler headroom.
    vmem_budget = 24 * 1024 * 1024
    vmem_limit = 48 * 1024 * 1024
    if block_b is None:
        block_b = _pick_block_b(B, Tp, dp, in_is, out_is, in_is, in_is, vmem_budget)
    assert B % block_b == 0

    cost = pl.CostEstimate(
        flops=B * (2 * Tp * dp * 3 * dp + 4 * Tp * Tp * dp),
        transcendentals=B * Tp * Tp,
        bytes_accessed=(xp.size * in_is + wqkv.size * in_is + bqkv.size * 4
                        + B * Tp * dp * out_is),
    )

    kernel = functools.partial(_fused_attention_kernel, t_valid=T)

    out_padded = pl.pallas_call(
        kernel,
        out_shape=jax.ShapeDtypeStruct((B, Tp, dp), out_dtype),
        grid_spec=pltpu.PrefetchScalarGridSpec(
            num_scalar_prefetch=0,
            grid=(B // block_b,),
            in_specs=[
                pl.BlockSpec((block_b, Tp, dp), lambda i: (i, 0, 0)),  # x (padded)
                pl.BlockSpec((dp, 3 * dp), lambda i: (0, 0)),          # fused Wqkv
                pl.BlockSpec((1, 3 * dp), lambda i: (0, 0)),           # fused bias
            ],
            out_specs=pl.BlockSpec((block_b, Tp, dp), lambda i: (i, 0, 0)),
        ),
        compiler_params=pltpu.CompilerParams(
            dimension_semantics=("parallel",),      # shards grid across TCs on v7x
            vmem_limit_bytes=vmem_limit,
        ),
        cost_estimate=cost,
    )(xp, wqkv, bqkv)

    # Crop padded query rows / feature columns.
    return out_padded[:, :T, :d]


def _reference(x, wq, wk, wv, bq, bk, bv):
    q = jnp.einsum("btd,od->bto", x, wq) + bq
    k = jnp.einsum("btd,od->bto", x, wk) + bk
    v = jnp.einsum("btd,od->bto", x, wv) + bv
    d = x.shape[-1]
    s = jnp.einsum("bqd,bkd->bqk", q, k) / (float(d) ** 0.5)
    p = jax.nn.softmax(s, axis=-1)
    return jnp.einsum("bqk,bkd->bqd", p, v)


if __name__ == "__main__":
    B, T, d = 2, 8, 32
    key = jax.random.PRNGKey(0)
    kx, kwq, kwk, kwv, kbq, kbk, kbv = jax.random.split(key, 7)

    x = jax.random.normal(kx, (B, T, d), dtype=jnp.float32)
    bound = 1.0 / (d ** 0.5)
    wq = jax.random.uniform(kwq, (d, d), minval=-bound, maxval=bound, dtype=jnp.float32)
    wk = jax.random.uniform(kwk, (d, d), minval=-bound, maxval=bound, dtype=jnp.float32)
    wv = jax.random.uniform(kwv, (d, d), minval=-bound, maxval=bound, dtype=jnp.float32)
    bq = jax.random.uniform(kbq, (d,), minval=-bound, maxval=bound, dtype=jnp.float32)
    bk = jax.random.uniform(kbk, (d,), minval=-bound, maxval=bound, dtype=jnp.float32)
    bv = jax.random.uniform(kbv, (d,), minval=-bound, maxval=bound, dtype=jnp.float32)

    out = my_self_attention(x, wq, wk, wv, bq, bk, bv)
    out = jax.block_until_ready(out)

    ref = _reference(x, wq, wk, wv, bq, bk, bv)
    assert out.shape == (B, T, d)
    # Tolerance accommodates bf16 MXU operands (f32 accumulation) and the EUP
    # approximate reciprocal in the softmax denominator.
    assert jnp.allclose(out, ref, atol=2e-2, rtol=2e-2), "mismatch vs reference"

    print("KERNEL_OK")
</pallas_src>

<mosaic_0001>
module attributes {stable_mosaic.version = 11 : i64} {
  func.func @_fused_attention_kernel(%arg0: i32, %arg1: memref<1x8x128xbf16, #tpu.memory_space<vmem>>, %arg2: memref<128x384xbf16, #tpu.memory_space<vmem>>, %arg3: memref<1x384xf32, #tpu.memory_space<vmem>>, %arg4: memref<1x8x128xf32, #tpu.memory_space<vmem>>) attributes {dimension_semantics = [#tpu.dimension_semantics<parallel>], iteration_bounds = array<i64: 2>, scalar_prefetch = 0 : i64, scratch_operands = 0 : i64, tpu.core_type = #tpu.core_type<tc>, window_params = [{transform_indices = @transform_0, window_bounds = array<i64: 1, 8, 128>}, {pipeline_mode = #tpu.pipeline_mode<synchronous>, transform_indices = @transform_1, window_bounds = array<i64: 128, 384>}, {pipeline_mode = #tpu.pipeline_mode<synchronous>, transform_indices = @transform_2, window_bounds = array<i64: 1, 384>}, {transform_indices = @transform_3, window_bounds = array<i64: 1, 8, 128>}]} {
    %c0 = arith.constant 0 : index
    %c0_0 = arith.constant 0 : index
    %c0_1 = arith.constant 0 : index
    %0 = vector.load %arg1[%c0, %c0_0, %c0_1] : memref<1x8x128xbf16, #tpu.memory_space<vmem>>, vector<1x8x128xbf16>
    %1 = vector.shape_cast %0 : vector<1x8x128xbf16> to vector<8x128xbf16>
    %c0_2 = arith.constant 0 : index
    %c0_3 = arith.constant 0 : index
    %2 = vector.load %arg2[%c0_2, %c0_3] : memref<128x384xbf16, #tpu.memory_space<vmem>>, vector<128x384xbf16>
    %cst = arith.constant dense<0.000000e+00> : vector<8x384xf32>
    %3 = tpu.matmul %1, %2, %cst {dimension_numbers = #tpu.dot_dimension_numbers<[1], [0], [0], [1], [0, 0, 1, 1], [], []>} : vector<8x128xbf16>, vector<128x384xbf16>, vector<8x384xf32> -> vector<8x384xf32>
    %c0_4 = arith.constant 0 : index
    %c0_5 = arith.constant 0 : index
    %4 = vector.load %arg3[%c0_4, %c0_5] : memref<1x384xf32, #tpu.memory_space<vmem>>, vector<1x384xf32>
    %5 = vector.broadcast %4 : vector<1x384xf32> to vector<8x384xf32>
    %6 = arith.addf %3, %5 : vector<8x384xf32>
    %7 = vector.shape_cast %6 : vector<8x384xf32> to vector<1x8x384xf32>
    %8 = arith.truncf %7 : vector<1x8x384xf32> to vector<1x8x384xbf16>
    %9 = vector.extract_strided_slice %8 {offsets = [0, 0, 0], sizes = [1, 8, 128], strides = [1, 1, 1]} : vector<1x8x384xbf16> to vector<1x8x128xbf16>
    %10 = vector.extract_strided_slice %8 {offsets = [0, 0, 128], sizes = [1, 8, 128], strides = [1, 1, 1]} : vector<1x8x384xbf16> to vector<1x8x128xbf16>
    %11 = vector.extract_strided_slice %8 {offsets = [0, 0, 256], sizes = [1, 8, 128], strides = [1, 1, 1]} : vector<1x8x384xbf16> to vector<1x8x128xbf16>
    %cst_6 = arith.constant dense<0.000000e+00> : vector<1x8x8xf32>
    %12 = tpu.matmul %9, %10, %cst_6 {dimension_numbers = #tpu.dot_dimension_numbers<[2], [2], [1], [1], [0, 0, 0, 1, 1, 1], [0], [0]>} : vector<1x8x128xbf16>, vector<1x8x128xbf16>, vector<1x8x8xf32> -> vector<1x8x8xf32>
    %cst_7 = arith.constant dense<0xFF800000> : vector<1x8xf32>
    %13 = vector.multi_reduction <maximumf>, %12, %cst_7 [2] : vector<1x8x8xf32> to vector<1x8xf32>
    %14 = vector.shape_cast %13 : vector<1x8xf32> to vector<1x8x1xf32>
    %15 = vector.broadcast %14 : vector<1x8x1xf32> to vector<1x8x8xf32>
    %16 = arith.subf %12, %15 : vector<1x8x8xf32>
    %17 = math.exp %16 : vector<1x8x8xf32>
    %cst_8 = arith.constant dense<0.000000e+00> : vector<1x8xf32>
    %18 = vector.multi_reduction <add>, %17, %cst_8 [2] : vector<1x8x8xf32> to vector<1x8xf32>
    %19 = vector.shape_cast %18 : vector<1x8xf32> to vector<1x8x1xf32>
    %20 = tpu.reciprocal %19 {approx = true} : vector<1x8x1xf32> -> vector<1x8x1xf32>
    %21 = vector.broadcast %20 : vector<1x8x1xf32> to vector<1x8x8xf32>
    %22 = arith.mulf %17, %21 : vector<1x8x8xf32>
    %23 = arith.truncf %22 : vector<1x8x8xf32> to vector<1x8x8xbf16>
    %cst_9 = arith.constant dense<0.000000e+00> : vector<1x8x128xf32>
    %24 = tpu.matmul %23, %11, %cst_9 {dimension_numbers = #tpu.dot_dimension_numbers<[2], [1], [1], [2], [0, 0, 0, 1, 1, 2], [0], [0]>} : vector<1x8x8xbf16>, vector<1x8x128xbf16>, vector<1x8x128xf32> -> vector<1x8x128xf32>
    %c0_10 = arith.constant 0 : index
    %c0_11 = arith.constant 0 : index
    %c0_12 = arith.constant 0 : index
    %25 = vector.load %arg4[%c0_10, %c0_11, %c0_12] : memref<1x8x128xf32, #tpu.memory_space<vmem>>, vector<1x8x128xf32>
    tpu.vector_store %arg4[%c0_10, %c0_11, %c0_12], %24 {strides = array<i32>} : memref<1x8x128xf32, #tpu.memory_space<vmem>>, vector<1x8x128xf32>,
    return
  }
  func.func @transform_0(%arg0: i32) -> (i32, i32, i32) {
    %c0_i32 = arith.constant 0 : i32
    %c0_i32_0 = arith.constant 0 : i32
    %c0_i32_1 = arith.constant 0 : i32
    return %arg0, %c0_i32, %c0_i32_0 : i32, i32, i32
  }
  func.func @transform_1(%arg0: i32) -> (i32, i32) {
    %c0_i32 = arith.constant 0 : i32
    %c0_i32_0 = arith.constant 0 : i32
    %c0_i32_1 = arith.constant 0 : i32
    return %c0_i32, %c0_i32_0 : i32, i32
  }
  func.func @transform_2(%arg0: i32) -> (i32, i32) {
    %c0_i32 = arith.constant 0 : i32
    %c0_i32_0 = arith.constant 0 : i32
    %c0_i32_1 = arith.constant 0 : i32
    return %c0_i32, %c0_i32_0 : i32, i32
  }
  func.func @transform_3(%arg0: i32) -> (i32, i32, i32) {
    %c0_i32 = arith.constant 0 : i32
    %c0_i32_0 = arith.constant 0 : i32
    %c0_i32_1 = arith.constant 0 : i32
    return %arg0, %c0_i32, %c0_i32_0 : i32, i32, i32
  }
}

</mosaic_0001>

<bundles_post_ra>
// kernel: tpu_custom_call.1
= control target key start
LH: loop header
LB: loop body
LE: loop exit
PB: predicated region body
PF: predicated region fallthrough
CT: control target
= control target key end

     0   :  { %8 = vsyncpa [#allocation3], 0  ;;  %s1208_s0 = inlined_call_operand.hbm [shape: bf16[2,8,128], index: 0, kind: input, shape index: {}]   ;;  %s1209_s1 = inlined_call_operand.hbm [shape: bf16[128,384], index: 1, kind: input, shape index: {}]   ;;  %s1210_s2 = inlined_call_operand.vmem [shape: f32[1,384], index: 2, kind: input, shape index: {}]   ;;  %s1211_s3 = inlined_call_operand.hbm [shape: f32[2,8,128], index: 3, kind: output, shape index: {}]  }
   0x1   :  { %10 = vsyncpa [#allocation3 + $0x1], 0 }
   0x2   :  { %11 = vsyncpa [#allocation6], 0 }
   0x3   :  { %12 = vsyncpa [#allocation4], 0 }
   0x4   :  { %14 = vsyncpa [#allocation4 + $0x1], 0  ;;  %s999_s12 = smov 0   ;;  %s1001_s13 = smov 0  }
   0x5   :  { %s1003_s14 = smov 0   ;;  %s1005_s15 = smov 0  }
   0x6 LB: > { %s1020_s16 = sadd.s32 4294967295, %s969_s15   ;;  %s659_s17 = sadd.s32 4294967294, %s969_s15   ;;  %s969_s15 = sphi %s1005_s15, %s1231_s15   ;;  %s965_s14 = sphi %s1003_s14, %s1230_s14   ;;  %s961_s13 = sphi %s1001_s13, %s1229_s13   ;;  %s957_s12 = sphi %s999_s12, %s1228_s12  }
   0x7   : > { %p40_p0 = scmp.ne.s32.totalorder %s961_s13, %s957_s12  ;;  %p1212_p1 = scmp.eq.s32.totalorder %s1020_s16, 0 }
   0x8   : > { %p112_p3 = scmp.eq.s32.totalorder %s659_s17, 1  ;;  %p660_p5 = scmp.ge.s32.totalorder %s969_s15, 1 }
   0x9   : > { %p1029_p4 = por %p1212_p1, %p40_p0  ;;  %p119_p7 = scmp.lt.s32.totalorder %s969_s15, 3 }
   0xa   : > { %p1034_p6 = por %p112_p3, %p40_p0  ;;  %s971_s21 = smov [#allocation5]  }
   0xb   : > { %s1215_s18 = scalar_select %p1029_p4, 1, 0 }
   0xc   : > { %s1216_s19 = scalar_select %p1034_p6, 1, 0 }
   0xd   : > { %p1039_p8 = pnand %p660_p5, %p119_p7  ;;  %s131_s22 = sshll.u32 %s971_s21, 4  ;;  %s1043_s22 = int_to_ptr.vmem [resolvable:$true] %s131_s22 }
   0xe   : > { %s1055_s24 = sadd.s32 1, %s969_s15   ;;  %s27_s25 = sadd.s32 1, %s965_s14 }
   0xf   : > { %s1217_s20 = scalar_select %p1039_p8, 1, 0 }
  0x10   : > { %p751_p9 = pneg %p1039_p8  ;;  %s24_s26 = ssub.s32 %s969_s15, %s1055_s24 }
  0x11   : > { %s841_s29 = scalar_lea.hbm %s1209_s1, 3072 }
  0x12   : > { %p1050_p11 = pnand %p751_p9, %p1212_p1  ;;  %p842_p12 = scmp.ne.s32.totalorder %s1209_s1, %s841_s29 }
  0x13   : > { %p848_p5 = scmp.lt.u32.totalorder %s841_s29, %s1209_s1 }
  0x14   : > { %p843_p13 = pneg %p1050_p11 }
  0x16   : > { %p844_p0 = pnand %p843_p13, %p842_p12 }
  0x18   : > { %p845_p3 = pneg %p844_p0 }
  0x1a   : > { %p850_p7 = pnand %p848_p5, %p845_p3 }
  0x1c   : > { %853 = shalt.err (!%p850_p7)
}
  0x1d   : > { %s854_s7 = scalar_lea.vmem %s1043_s22, 3072  ;;  %p862_p2 = scmp.lt.s32.totalorder %s1043_s22, %s1043_s22 }
  0x1e   : > { %p855_p9 = scmp.ne.s32.totalorder %s1043_s22, %s854_s7  ;;  %p863_p6 = scmp.lt.s32.totalorder %s854_s7, %s854_s7 }
  0x20   : > { %p857_p10 = pnand %p855_p9, %p843_p13  ;;  %p864_p4 = por %p863_p6, %p862_p2 }
  0x22   : > { %p858_p1 = pneg %p857_p10 }
  0x24   : > { %p865_p8 = pnand %p864_p4, %p858_p1 }
  0x26   : > { %868 = shalt.err (!%p865_p8)
}
  0x27   : > { %s972_s8 = smov 192   ;;  %s973_s9 = smov 12  }
  0x28   : > { %754 = dma.hbm_to_vmem [thread:$0]  (!%p1050_p11), %s1209_s1, 3072, %s1043_s22, [#allocation6], %s972_s8, %s972_s8, %s973_s9  }
  0x29   : > { %p25_p2 = scmp.eq.s32.totalorder %s24_s26, 0  ;;  %p34_p1 = scmp.ne.s32.totalorder %s965_s14, %s961_s13 }
  0x2a   : > { %p35_p4 = scmp.eq.s32.totalorder %s969_s15, 0  ;;  %p764_p6 = scmp.lt.s32.totalorder %s969_s15, 2 }
  0x2b   : > { %s1086_s17 = scalar_select %p25_p2, %s965_s14, %s27_s25  }
  0x2c   : > { %p36_p8 = por %p35_p4, %p34_p1  ;;  %p1219_p10 = scmp.eq.s32.totalorder %s1020_s16, 1 }
  0x2d   : > { %s148_s27 = sand.u32 1, %s965_s14   ;;  %s664_s28 = sshll.u32 %s969_s15, 6 }
  0x2e   : > { %p1090_p12 = por %p1219_p10, %p34_p1  ;;  %s663_s29 = sshll.u32 %s148_s27, 2 }
  0x2f   : > { %s1099_s4 = scalar_lea.hbm %s1208_s0, %s664_s28  ;;  %s152_s22 = scalar_lea.vmem [#allocation2], %s663_s29 }
  0x30   : > { %s159_s25 = sshll.u32 %s152_s22, 4  ;;  %p1101_p11 = pnand %p764_p6, %p36_p8  ;;  %s1105_s25 = int_to_ptr.vmem [resolvable:$true] %s159_s25 }
  0x31   : > { %s149_s5 = scalar_lea.sflag [#allocation3], %s148_s27  ;;  %s869_s6 = scalar_lea.hbm %s1099_s4, 64 }
  0x32   : > { %p870_p13 = scmp.ne.s32.totalorder %s1099_s4, %s869_s6  ;;  %p871_p0 = pneg %p1101_p11 }
  0x33   : > { %s874_s9 = scalar_lea.hbm %s1208_s0, 128  ;;  %p875_p7 = scmp.lt.u32.totalorder %s1099_s4, %s1208_s0 }
  0x34   : > { %p872_p3 = pnand %p871_p0, %p870_p13  ;;  %p876_p9 = scmp.lt.u32.totalorder %s874_s9, %s869_s6 }
  0x35   : > { %p878_p1 = scmp.lt.u32.totalorder %s869_s6, %s1099_s4 }
  0x36   : > { %p873_p5 = pneg %p872_p3  ;;  %p877_p2 = por %p876_p9, %p875_p7 }
  0x38   : > { %p879_p4 = por %p878_p1, %p877_p2 }
  0x3a   : > { %p880_p6 = pnand %p879_p4, %p873_p5 }
  0x3c   : > { %883 = shalt.err (!%p880_p6)
}
  0x3d   : > { %s884_s27 = scalar_lea.vmem %s1105_s25, 64  ;;  %s974_s28 = smov [#allocation2]  }
  0x3e   : > { %p885_p8 = scmp.ne.s32.totalorder %s1105_s25, %s884_s27  ;;  %s889_s29 = sshll.u32 %s974_s28, 4  ;;  %s890_s29 = int_to_ptr.vmem [resolvable:$false] %s889_s29 }
  0x3f   : > { %s891_s23 = scalar_lea.vmem %s890_s29, 128  ;;  %p892_p3 = scmp.lt.s32.totalorder %s1105_s25, %s890_s29 }
  0x40   : > { %p887_p10 = pnand %p885_p8, %p871_p0  ;;  %p893_p7 = scmp.lt.s32.totalorder %s891_s23, %s884_s27 }
  0x42   : > { %p888_p13 = pneg %p887_p10  ;;  %p894_p9 = por %p893_p7, %p892_p3 }
  0x44   : > { %p895_p2 = pnand %p894_p9, %p888_p13 }
  0x46   : > { %898 = shalt.err (!%p895_p2)
}
  0x47   : > { %758 = dma.hbm_to_vmem [thread:$0]  (!%p1101_p11), %s1099_s4, 64, %s1105_s25, %s149_s5  }
  0x48   : > { %p1222_p5 = scmp.ne.s32.totalorder %s1217_s20, 0 }
  0x49   : > { %s1135_s30 = sand.u32 (!%p1222_p5), 1, %s961_s13   ;;  %p1223_p0 = scmp.ne.s32.totalorder (!%p1222_p5), %s1215_s18, 0 }
  0x4a   : > { %168 = sbr.rel (%p1222_p5) target bundleno = 1097 (0x449), region = 32  ;;  %s666_s22 = sshll.u32 (!%p1222_p5), %s1135_s30, 2 }
  0x4b   : > { %s171_s6 = scalar_lea.sflag (!%p1222_p5), [#allocation3], %s1135_s30  ;;  %s1139_s7 = scalar_lea.vmem (!%p1222_p5), [#allocation2], %s666_s22 }
  0x51   : > { %944 = dma.done.wait (%p1223_p0), %s171_s6, 64  }
  0x52   : > { %946 = vsyncadd (%p1223_p0), %s171_s6, 4294967232  ;;  %p1224_p11 = scmp.eq.s32.totalorder %s1020_s16, 0 }
  0x54   : > { %948 = dma.done.wait (%p1224_p11), [#allocation6], 3072   ;;  %p1225_p1 = pmov %p1224_p11 }
  0x55   : > { %v975_v0 = vmov 0   ;;  %v805_v1 = vld [vmem:[#allocation5 + $0x4] ss:$12 sps:$4 sm:$0xff]   ;;  %v807_v2 = vld [vmem:[#allocation5] ss:$12 sps:$4 sm:$0xff]   ;;  %v976_v18 = vmov 0.0   ;;  %v237_v19 = vlaneseq }
  0x56   : > { %950 = vsyncadd (%p1225_p1), [#allocation6], 4294964224  ;;  %412 = vmatprep.mubr.bf16.mxu0 %v975_v0  ;;  %380 = vmatprep.subr.bf16.mxu0 %v805_v1  ;;  %v808_v3 = vld [vmem:[#allocation5 + $0x1c] ss:$12 sps:$4 sm:$0xff]   ;;  %v810_v4 = vld [vmem:[#allocation5 + $0x18] ss:$12 sps:$4 sm:$0xff]  }
  0x57   : > { %381 = vmatpush1.bf16.msra.mxu0 %v807_v2  ;;  %v811_v5 = vld [vmem:[#allocation5 + $0x34] ss:$12 sps:$4 sm:$0xff]   ;;  %v813_v6 = vld [vmem:[#allocation5 + $0x30] ss:$12 sps:$4 sm:$0xff]   ;;  %v814_v7 = vld [vmem:[#allocation5 + $0x4c] ss:$12 sps:$4 sm:$0xff]   ;;  %711 = vmatprep.subr.bf16.mxu1 %v976_v18 }
  0x58   : > { %382 = vmatprep.subr.bf16.mxu0 %v808_v3  ;;  %v816_v8 = vld [vmem:[#allocation5 + $0x48] ss:$12 sps:$4 sm:$0xff]   ;;  %v817_v9 = vld [vmem:[#allocation5 + $0x64] ss:$12 sps:$4 sm:$0xff]   ;;  %v819_v10 = vld [vmem:[#allocation5 + $0x60] ss:$12 sps:$4 sm:$0xff]  }
  0x59   : > { %v820_v11 = vld [vmem:[#allocation5 + $0x7c] ss:$12 sps:$4 sm:$0xff]   ;;  %v822_v12 = vld [vmem:[#allocation5 + $0x78] ss:$12 sps:$4 sm:$0xff]   ;;  %v823_v13 = vld [vmem:[#allocation5 + $0x94] ss:$12 sps:$4 sm:$0xff]  }
  0x5a   : > { %v825_v14 = vld [vmem:[#allocation5 + $0x90] ss:$12 sps:$4 sm:$0xff]   ;;  %v826_v15 = vld [vmem:[#allocation5 + $0xac] ss:$12 sps:$4 sm:$0xff]   ;;  %v828_v16 = vld [vmem:[#allocation5 + $0xa8] ss:$12 sps:$4 sm:$0xff]  }
  0x5b   : > { %383 = vmatpush1.bf16.msra.mxu0 %v810_v4  ;;  %v202_v17 = vld [vmem:[%s1139_s7] sm:$0xf]  ;;  %vm977_vm0 = vmmov 0   ;;  %v238_v20 = vshrl.u32 %v237_v19, 7  ;;  %v829_v34 = vld [vmem:[#allocation5 + $0x8] ss:$12 sps:$4 sm:$0xff]  }
  0x5c   : > { %384 = vmatprep.subr.bf16.mxu0 %v811_v5  ;;  %727 = vmatprep.mubr.msk.bf16.mxu1 %vm977_vm0, %v976_v18  ;;  %v235_v22 = vld [vmem:[%s1210_s2] sm:$0x7]  ;;  %v830_v35 = vld [vmem:[#allocation5 + $0x20] ss:$12 sps:$4 sm:$0xff]   ;;  %v832_v37 = vld [vmem:[#allocation5 + $0x50] ss:$12 sps:$4 sm:$0xff]  }
  0x5d   : > { %v243_v21 = vsub.s32 1, %v238_v20  ;;  %v239_v24 = vsub.s32 0, %v238_v20  ;;  %712 = vmatpush3.bf16.msra.mxu1 %v829_v34  ;;  %v831_v36 = vld [vmem:[#allocation5 + $0x38] ss:$12 sps:$4 sm:$0xff]   ;;  %v833_v38 = vld [vmem:[#allocation5 + $0x68] ss:$12 sps:$4 sm:$0xff]  }
  0x5e   : > { %713 = vmatprep.subr.bf16.mxu1 %v976_v18  ;;  %v834_v39 = vld [vmem:[#allocation5 + $0x80] ss:$12 sps:$4 sm:$0xff]   ;;  %v835_v40 = vld [vmem:[#allocation5 + $0x98] ss:$12 sps:$4 sm:$0xff]   ;;  %v836_v41 = vld [vmem:[#allocation5 + $0xb0] ss:$12 sps:$4 sm:$0xff]  }
  0x5f   : > { %385 = vmatpush1.bf16.msra.mxu0 %v813_v6  ;;  %v244_v23 = vrot.slane %v235_v22, %v243_v21  ;;  %v240_v29 = vrot.slane %v235_v22, %v239_v24  ;;  %vm504_vm1 = vcmask 64512   ;;  %v247_v47 = vsub.s32 2, %v238_v20  ;;  %s668_s4 = sshll.u32 %s1135_s30, 3  ;;  %s695_s5 = sshll.u32 %s1020_s16, 7 }
  0x60   : > { %386 = vmatprep.subr.bf16.mxu0 %v814_v7  ;;  %vm520_vm2 = vcmask 1043456   ;;  %s200_s25 = scalar_lea.vmem [#allocation7], %s668_s4  ;;  %s1166_s10 = scalar_lea.hbm %s1211_s3, %s695_s5 }
  0x61   : > { %714 = vmatpush3.bf16.msra.mxu1 %v830_v35  ;;  %v248_v48 = vrot.slane %v235_v22, %v247_v47  ;;  %s579_s26 = sshll.u32 %s200_s25, 4  ;;  %s566_s11 = scalar_lea.sflag [#allocation4], %s1135_s30  ;;  %s1161_s26 = int_to_ptr.vmem [resolvable:$true] %s579_s26 }
  0x62   : > { %715 = vmatprep.subr.bf16.mxu1 %v976_v18  ;;  %s899_s27 = scalar_lea.vmem %s1161_s26, 128  ;;  %s978_s16 = smov [#allocation7]  }
  0x63   : > { %387 = vmatpush1.bf16.msra.mxu0 %v816_v8  ;;  %p900_p4 = scmp.ne.s32.totalorder %s1161_s26, %s899_s27  ;;  %s903_s28 = sshll.u32 %s978_s16, 4  ;;  %s904_s28 = int_to_ptr.vmem [resolvable:$false] %s903_s28 }
  0x64   : > { %388 = vmatprep.subr.bf16.mxu0 %v817_v9  ;;  %s905_s29 = scalar_lea.vmem %s904_s28, 256  ;;  %p906_p10 = scmp.lt.s32.totalorder %s1161_s26, %s904_s28 }
  0x65   : > { %716 = vmatpush3.bf16.msra.mxu1 %v831_v36  ;;  %p901_p6 = pnand %p900_p4, %p1090_p12  ;;  %p907_p13 = scmp.lt.s32.totalorder %s905_s29, %s899_s27 }
  0x66   : > { %717 = vmatprep.subr.bf16.mxu1 %v976_v18 }
  0x67   : > { %389 = vmatpush1.bf16.msra.mxu0 %v819_v10  ;;  %p902_p8 = pneg %p901_p6  ;;  %p908_p3 = por %p907_p13, %p906_p10 }
  0x68   : > { %390 = vmatprep.subr.bf16.mxu0 %v820_v11 }
  0x69   : > { %718 = vmatpush3.bf16.msra.mxu1 %v832_v37  ;;  %p909_p7 = pnand %p908_p3, %p902_p8 }
  0x6a   : > { %719 = vmatprep.subr.bf16.mxu1 %v976_v18 }
  0x6b   : > { %391 = vmatpush1.bf16.msra.mxu0 %v822_v12 }
  0x6c   : > { %392 = vmatprep.subr.bf16.mxu0 %v823_v13 }
  0x6d   : > { %720 = vmatpush3.bf16.msra.mxu1 %v833_v38 }
  0x6e   : > { %721 = vmatprep.subr.bf16.mxu1 %v976_v18 }
  0x6f   : > { %393 = vmatpush1.bf16.msra.mxu0 %v825_v14 }
  0x70   : > { %394 = vmatprep.subr.bf16.mxu0 %v826_v15 }
  0x71   : > { %722 = vmatpush3.bf16.msra.mxu1 %v834_v39 }
  0x72   : > { %723 = vmatprep.subr.bf16.mxu1 %v976_v18 }
  0x73   : > { %395 = vmatpush1.bf16.msra.mxu0 %v828_v16 }
  0x74   : > { %731 = vmatprep.subr.bf16.mxu0 %v976_v18 }
  0x75   : > { %724 = vmatpush3.bf16.msra.mxu1 %v835_v40 }
  0x76   : > { %413 = vmatmul.mubr.bf16.vlgmr.msra.gmra.mrb[0].mxu0 %v202_v17  ;;  %725 = vmatprep.subr.bf16.mxu1 %v976_v18 }
  0x77   : > { %733 = vmatprep.mubr.msk.bf16.mxu0 %vm977_vm0, %v976_v18 }
  0x79   : > { %726 = vmatpush3.bf16.msra.mxu1 %v836_v41 }
  0x7a   : > { %737 = vmatprep.subr.bf16.mxu1 %v976_v18 }
  0x7c   : > { %728 = vmatmul.mubr.bf16.vlgmr.msra.gmra.mrb[0].mxu1 %v202_v17 }
  0x7d   : > { %739 = vmatprep.mubr.msk.bf16.mxu1 %vm977_vm0, %v976_v18 }
 0x149   : > { %v414_v25 = vpop.f32.mrb[0].mxu0 }
 0x14a   : > { %v416_v26 = vpop.f32.mrb[1].mxu0  ;;  %v415_v32 = vadd.f32 %v414_v25, %v240_v29 }
 0x14b   : > { %v417_v27 = vadd.f32 %v416_v26, %v244_v23  ;;  %v418_v28 = vpop.f32.mrb[2].mxu0 }
 0x14c   : > { %v419_v30 = vpop.f32.mrb[3].mxu0  ;;  %v461_v33 = vpack.c.bf16 %v415_v32, %v415_v32 }
 0x14d   : > { %v462_v31 = vpack.c.bf16 %v417_v27, %v417_v27 }
 0x14f   : > { %732 = vmatpush3.bf16.xpose.msra.mxu0 %v462_v31  ;;  %v455_v49 = vpop.f32.mrb[0].mxu1 }
 0x150   : > { %v456_v50 = vadd.f32 %v455_v49, %v248_v48  ;;  %v729_v51 = vpop.f32.mrb[1].mxu1 }
 0x151   : > { %v458_v52 = vpop.f32.mrb[2].mxu1 }
 0x152   : > { %v463_v53 = vpack.c.bf16 %v456_v50, %v456_v50  ;;  %v730_v54 = vpop.f32.mrb[3].mxu1 }
 0x154   : > { %v522_v55 = vsel %vm520_vm2, %v463_v53, 0 }
 0x155   : > { %738 = vmatpush3.bf16.msra.mxu1 %v522_v55 }
 0x156   : > { %734 = vmatmul.mubr.bf16.vlgmr.msra.gmra.mrb[4].mxu0 %v461_v33 }
 0x229   : > { %v498_v42 = vpop.f32.mrb[4].mxu0 }
 0x22a   : > { %v735_v43 = vpop.f32.mrb[5].mxu0  ;;  %v505_v44 = vsel %vm504_vm1, %v498_v42, -inf }
 0x22b   : > { %506 = vmax.xlane.f32.xlu0 %v505_v44  ;;  %v501_v45 = vpop.f32.mrb[6].mxu0 }
 0x22c   : > { %v736_v46 = vpop.f32.mrb[7].mxu0 }
 0x2b8   : > { %v507_v56 = vpop.xlane.xlu0 %506 }
 0x2b9   : > { %v508_v57 = vsub.f32 %v498_v42, %v507_v56 }
 0x2bb   : > { %v509_v58 = vmul.f32 1.442695, %v508_v57 }
 0x2bd   : > { %837 = vpow2.f32 %v509_v58 }
 0x2c7   : > { %v838_v59 = vpop.eup %837 }
 0x2c8   : > { %v511_v60 = vsel %vm504_vm1, %v838_v59, 0.0 }
 0x2c9   : > { %512 = vadd.xlane.f32.xlu0 %v511_v60 }
 0x356   : > { %v513_v61 = vpop.xlane.xlu0 %512 }
 0x357   : > { %839 = vrcp.f32 %v513_v61 }
 0x361   : > { %v840_v62 = vpop.eup %839 }
 0x362   : > { %v515_v63 = vmul.f32 %v840_v62, %v838_v59 }
 0x364   : > { %v516_v0 = vpack.c.bf16 %v515_v63, %v515_v63 }
 0x366   : > { %740 = vmatmul.mubr.msk.bf16.vlgmr.msra.gmra.mrb[4].mxu1 %vm504_vm1, %v516_v0 }
 0x439   : > { %v558_v1 = vpop.f32.mrb[4].mxu1 }
 0x43a   : > { %564 = vst [vmem:[%s200_s25] sm:$0xff] %v558_v1  ;;  %v741_v2 = vpop.f32.mrb[5].mxu1 }
 0x43b   : > { %v561_v3 = vpop.f32.mrb[6].mxu1 }
 0x43c   : > { %912 = shalt.err (!%p909_p7)
}
 0x43d   : > { %s913_s23 = scalar_lea.hbm %s1166_s10, 128  ;;  %s917_s6 = scalar_lea.hbm %s1211_s3, 256 }
 0x43e   : > { %p914_p9 = scmp.ne.s32.totalorder %s1166_s10, %s913_s23  ;;  %p918_p0 = scmp.lt.u32.totalorder %s1166_s10, %s1211_s3 }
 0x43f   : > { %p919_p11 = scmp.lt.u32.totalorder %s917_s6, %s913_s23  ;;  %p921_p4 = scmp.lt.u32.totalorder %s913_s23, %s1166_s10 }
 0x440   : > { %p915_p2 = pnand %p914_p9, %p1090_p12 }
 0x441   : > { %p920_p1 = por %p919_p11, %p918_p0 }
 0x442   : > { %p916_p5 = pneg %p915_p2 }
 0x443   : > { %p922_p6 = por %p921_p4, %p920_p1 }
 0x445   : > { %p923_p8 = pnand %p922_p6, %p916_p5 }
 0x447   : > { %926 = shalt.err (!%p923_p8)
}
 0x448   : > { %749 = dma.vmem_to_hbm [thread:$0]  (%p1090_p12), %s1161_s26, 128, %s1166_s10, %s566_s11   ;;  %v742_v4 = vpop.f32.mrb[7].mxu1 }
 0x449 PF: > { %s591_s20 = sand.u32 1, %s957_s12   ;;  %p1226_p10 = scmp.ne.s32.totalorder %s1216_s19, 0 }
 0x44a   : > { %p1227_p13 = scmp.ge.s32.totalorder %s969_s15, 2  ;;  %s592_s4 = scalar_lea.sflag [#allocation4], %s591_s20 }
 0x44c   : > { %p760_p3 = pnand %p1227_p13, %p1226_p10 }
 0x44e   : > { %952 = dma.done.wait (!%p760_p3), %s592_s4, 128  }
 0x44f   : > { %954 = vsyncadd (!%p760_p3), %s592_s4, 4294967168  ;;  %p17_p7 = scmp.ge.s32.totalorder %s1055_s24, 4   ;;  %s1228_s12 = smov %s961_s13 }
 0x450   : > { %s1229_s13 = smov %s965_s14  ;;  %s1230_s14 = smov %s1086_s17 }
 0x451   : > { %s1231_s15 = smov %s1055_s24  ;;  %19 = sbr.rel (!%p17_p7) target bundleno = 6 (0x6), region = 81 }
 0x458   :  { %597 = vsyncpa [#allocation3], 1 }
 0x459   :  { %599 = vsyncpa [#allocation3 + $0x1], 1 }
 0x45a   :  { %600 = vsyncpa [#allocation6], 1 }
 0x45b   :  { %601 = vsyncpa [#allocation4], 1 }
 0x45c   :  { %603 = vsyncpa [#allocation4 + $0x1], 1 }

</bundles_post_ra>
